<compile_context>
chip_gen: v5e
topology: v5e:2x2
jax: 0.10.0
libtpu: 0.0.40
codegen_flags: <defaults>
</compile_context>

<pallas_src>
import jax
import jax.numpy as jnp
from jax.experimental import pallas as pl
from jax.experimental.pallas import tpu as pltpu


def linear_kernel(x_ref, w_ref, b_ref, o_ref):
    # VPU multiply + XLU cross-lane reduce (no MXU: N=1 wastes the array and
    # serializes through the result FIFO).
    xb = x_ref[...].astype(jnp.float32)                  # (tb, F)
    wr = w_ref[...].astype(jnp.float32)                  # (1, F), broadcast over rows
    partial = jnp.sum(xb * wr, axis=-1, keepdims=True)   # (tb, 1)
    # Cheap XLU transpose of the partials -> full-width, lane-dense store.
    o_ref[...] = (partial.T + b_ref[0]).astype(o_ref.dtype)   # (1, tb)


def linear_net_forward(x, weight, bias, *, tb_max=1024):
    """Pallas forward for LinearNet: y = x @ weight.T + bias.

    x:      (B, F)  float
    weight: (1, F)  -- PyTorch nn.Linear(F, 1).weight layout
    bias:   (1,)    -- PyTorch nn.Linear(F, 1).bias
    returns (B, 1)
    """
    B, F = x.shape
    out_dtype = x.dtype

    # --- batch tiling -------------------------------------------------------
    # Lane-dense output wants tb to be a multiple of 128; cap the x tile at
    # ~4 MiB so the double-buffered pipeline stays well inside v7x's VMEM.
    rows_for_4mib = max(128, ((4 * 1024 * 1024) // (F * 4)) // 128 * 128)
    tb = min(tb_max, rows_for_4mib)
    b_pad128 = pl.cdiv(B, 128) * 128
    tb = min(tb, b_pad128)
    b_pad = pl.cdiv(b_pad128, tb) * tb

    if b_pad != B:
        x = jnp.pad(x, ((0, b_pad - B), (0, 0)))

    w_row = weight.reshape(1, F).astype(x.dtype)
    b_smem = bias.reshape(1).astype(jnp.float32)

    grid = (b_pad // tb,)

    cost = pl.CostEstimate(
        flops=2 * b_pad * F,
        transcendentals=0,
        bytes_accessed=4 * (b_pad * F + F + b_pad + 1),
    )

    y_row = pl.pallas_call(
        linear_kernel,
        out_shape=jax.ShapeDtypeStruct((1, b_pad), out_dtype),
        grid=grid,
        in_specs=[
            pl.BlockSpec((tb, F), lambda i: (i, 0)),            # x: tiled over batch
            pl.BlockSpec((1, F), lambda i: (0, 0)),             # weight row: resident
            pl.BlockSpec(memory_space=pltpu.MemorySpace.SMEM),  # bias: SMEM scalar
        ],
        out_specs=pl.BlockSpec((1, tb), lambda i: (0, i)),      # lane-dense output
        compiler_params=pltpu.CompilerParams(
            dimension_semantics=("parallel",),   # shard batch tiles across TCs (v7x)
            vmem_limit_bytes=32 * 1024 * 1024,
        ),
        cost_estimate=cost,
    )(x, w_row, b_smem)

    # Layout plumbing on the tiny output only: (1, B_pad) -> (B, 1).
    return y_row.reshape(b_pad, 1)[:B]


if __name__ == "__main__":
    key = jax.random.PRNGKey(0)
    kx, kw, kb = jax.random.split(key, 3)

    batch, n_feature = 8, 2  # classic linear-regression example shapes

    x = jax.random.normal(kx, (batch, n_feature), dtype=jnp.float32)
    # nn.Linear(n_feature, 1) parameter shapes (PyTorch layout).
    weight = jax.random.normal(kw, (1, n_feature), dtype=jnp.float32) * 0.01
    bias = jax.random.normal(kb, (1,), dtype=jnp.float32) * 0.01

    y = linear_net_forward(x, weight, bias)
    y = jax.block_until_ready(y)

    # Reference check against plain JAX.
    y_ref = x @ weight.T + bias
    assert y.shape == (batch, 1)
    assert jnp.allclose(y, y_ref, atol=1e-5), "mismatch vs reference"

    print("KERNEL_OK")
</pallas_src>

<mosaic_0001>
module attributes {stable_mosaic.version = 11 : i64} {
  func.func @linear_kernel(%arg0: i32, %arg1: memref<128x2xf32, #tpu.memory_space<vmem>>, %arg2: memref<1x2xf32, #tpu.memory_space<vmem>>, %arg3: memref<1xf32, #tpu.memory_space<smem>>, %arg4: memref<1x128xf32, #tpu.memory_space<vmem>>) attributes {dimension_semantics = [#tpu.dimension_semantics<parallel>], iteration_bounds = array<i64: 1>, scalar_prefetch = 0 : i64, scratch_operands = 0 : i64, tpu.core_type = #tpu.core_type<tc>, window_params = [{transform_indices = @transform_0, window_bounds = array<i64: 128, 2>}, {pipeline_mode = #tpu.pipeline_mode<synchronous>, transform_indices = @transform_1, window_bounds = array<i64: 1, 2>}, {transform_indices = @transform_2, window_bounds = array<i64: 1>}, {transform_indices = @transform_3, window_bounds = array<i64: 1, 128>}]} {
    %c0 = arith.constant 0 : index
    %c0_0 = arith.constant 0 : index
    %0 = vector.load %arg1[%c0, %c0_0] : memref<128x2xf32, #tpu.memory_space<vmem>>, vector<128x2xf32>
    %c0_1 = arith.constant 0 : index
    %c0_2 = arith.constant 0 : index
    %1 = vector.load %arg2[%c0_1, %c0_2] : memref<1x2xf32, #tpu.memory_space<vmem>>, vector<1x2xf32>
    %2 = vector.broadcast %1 : vector<1x2xf32> to vector<128x2xf32>
    %3 = arith.mulf %0, %2 : vector<128x2xf32>
    %cst = arith.constant dense<0.000000e+00> : vector<128xf32>
    %4 = vector.multi_reduction <add>, %3, %cst [1] : vector<128x2xf32> to vector<128xf32>
    %5 = vector.shape_cast %4 : vector<128xf32> to vector<128x1xf32>
    %6 = tpu.transpose %5, [1, 0] : vector<128x1xf32> -> vector<1x128xf32>
    %c0_3 = arith.constant 0 : index
    %7 = memref.load %arg3[%c0_3] : memref<1xf32, #tpu.memory_space<smem>>
    %8 = vector.broadcast %7 : f32 to vector<1x128xf32>
    %9 = arith.addf %6, %8 : vector<1x128xf32>
    %c0_4 = arith.constant 0 : index
    %c0_5 = arith.constant 0 : index
    %10 = vector.load %arg4[%c0_4, %c0_5] : memref<1x128xf32, #tpu.memory_space<vmem>>, vector<1x128xf32>
    tpu.vector_store %arg4[%c0_4, %c0_5], %9 {strides = array<i32>} : memref<1x128xf32, #tpu.memory_space<vmem>>, vector<1x128xf32>,
    return
  }
  func.func @transform_0(%arg0: i32) -> (i32, i32) {
    %c0_i32 = arith.constant 0 : i32
    %c0_i32_0 = arith.constant 0 : i32
    return %arg0, %c0_i32 : i32, i32
  }
  func.func @transform_1(%arg0: i32) -> (i32, i32) {
    %c0_i32 = arith.constant 0 : i32
    %c0_i32_0 = arith.constant 0 : i32
    %c0_i32_1 = arith.constant 0 : i32
    return %c0_i32, %c0_i32_0 : i32, i32
  }
  func.func @transform_2(%arg0: i32) -> i32 {
    %c0_i32 = arith.constant 0 : i32
    %c0_i32_0 = arith.constant 0 : i32
    return %c0_i32 : i32
  }
  func.func @transform_3(%arg0: i32) -> (i32, i32) {
    %c0_i32 = arith.constant 0 : i32
    %c0_i32_0 = arith.constant 0 : i32
    return %c0_i32, %arg0 : i32, i32
  }
}

</mosaic_0001>

<bundles_post_ra>
// kernel: tpu_custom_call.1
= control target key start
LH: loop header
LB: loop body
LE: loop exit
PB: predicated region body
PF: predicated region fallthrough
CT: control target
= control target key end

     0   :  { %vm52_vm0 = vcmask 15360   ;;  %s293_s0 = inlined_call_operand.vmem [shape: f32[128,2], index: 0, kind: input, shape index: {}]   ;;  %s294_s1 = inlined_call_operand.vmem [shape: f32[1,2], index: 1, kind: input, shape index: {}]   ;;  %s295_s2 = inlined_call_operand.<no memory space> [shape: f32[1], index: 2, kind: input, shape index: {}]   ;;  %s296_s3 = inlined_call_operand.hbm [shape: f32[1,128], index: 3, kind: output, shape index: {}]  }
   0x1   :  { %v16_v0 = vld [vmem:[%s293_s0] sm:$0xff]  ;;  %v18_v2 = vld [vmem:[%s293_s0 + $0x10] sm:$0xff]  ;;  %v17_v6 = vld [vmem:[%s293_s0 + $0x8] sm:$0xff] }
   0x2   :  { %v208_v1 = vld [vmem:[%s294_s1] ss:$0 sm:$0xff]  ;;  %v19_v7 = vld [vmem:[%s293_s0 + $0x18] sm:$0xff]  ;;  %v21_v11 = vld [vmem:[%s293_s0 + $0x28] sm:$0xff] }
   0x3   :  { %v36_v3 = vmul.f32 %v208_v1, %v16_v0  ;;  %v38_v4 = vmul.f32 %v208_v1, %v18_v2  ;;  %v20_v5 = vld [vmem:[%s293_s0 + $0x20] sm:$0xff] }
   0x4   :  { %v40_v8 = vmul.f32 %v208_v1, %v20_v5 }
   0x5   :  { %v53_v9 = vsel %vm52_vm0, %v36_v3, 0.0  ;;  %v59_v10 = vsel %vm52_vm0, %v38_v4, 0.0 }
   0x6   :  { %9 = vsyncpa [#allocation4], 0  ;;  %54 = vadd.xlane.f32.xlu0 %v53_v9  ;;  %60 = vadd.xlane.f32.xlu1 %v59_v10  ;;  %v65_v12 = vsel %vm52_vm0, %v40_v8, 0.0  ;;  %v37_v13 = vmul.f32 %v208_v1, %v17_v6  ;;  %v39_v14 = vmul.f32 %v208_v1, %v19_v7  ;;  %v41_v15 = vmul.f32 %v208_v1, %v21_v11  ;;  %v23_v19 = vld [vmem:[%s293_s0 + $0x38] sm:$0xff]  ;;  %v22_v20 = vld [vmem:[%s293_s0 + $0x30] sm:$0xff]  ;;  %s181_s19 = smov [#allocation3]  }
   0x7   :  { %66 = vadd.xlane.f32.xlu2 %v65_v12  ;;  %v24_v21 = vld [vmem:[%s293_s0 + $0x40] sm:$0xff]  ;;  %v43_v22 = vmul.f32 %v208_v1, %v23_v19  ;;  %v42_v23 = vmul.f32 %v208_v1, %v22_v20  ;;  %v26_v27 = vld [vmem:[%s293_s0 + $0x50] sm:$0xff]  ;;  %v25_v29 = vld [vmem:[%s293_s0 + $0x48] sm:$0xff]  ;;  %s142_s20 = sshll.u32 %s181_s19, 4  ;;  %s144_s1 = sshll.u32 %s296_s3, 4  ;;  %s143_s20 = int_to_ptr.vmem [resolvable:$true] %s142_s20  ;;  %s145_s1 = int_to_ptr.hbm [resolvable:$true] %s144_s1 }
   0x8   :  { %v56_v16 = vsel %vm52_vm0, %v37_v13, 0.0  ;;  %v62_v17 = vsel %vm52_vm0, %v39_v14, 0.0  ;;  %v68_v18 = vsel %vm52_vm0, %v41_v15, 0.0  ;;  %v44_v24 = vmul.f32 %v208_v1, %v24_v21  ;;  %v27_v30 = vld [vmem:[%s293_s0 + $0x58] sm:$0xff]  ;;  %v29_v36 = vld [vmem:[%s293_s0 + $0x68] sm:$0xff]  ;;  %v28_v38 = vld [vmem:[%s293_s0 + $0x60] sm:$0xff] }
   0x9   :  { %v74_v25 = vsel %vm52_vm0, %v43_v22, 0.0  ;;  %v71_v26 = vsel %vm52_vm0, %v42_v23, 0.0  ;;  %v46_v31 = vmul.f32 %v208_v1, %v26_v27  ;;  %v45_v32 = vmul.f32 %v208_v1, %v25_v29  ;;  %v30_v39 = vld [vmem:[%s293_s0 + $0x70] sm:$0xff]  ;;  %v31_v46 = vld [vmem:[%s293_s0 + $0x78] sm:$0xff] }
   0xa   :  { %v77_v28 = vsel %vm52_vm0, %v44_v24, 0.0  ;;  %v47_v33 = vmul.f32 %v208_v1, %v27_v30  ;;  %v49_v40 = vmul.f32 %v208_v1, %v29_v36  ;;  %v48_v41 = vmul.f32 %v208_v1, %v28_v38 }
   0xb   :  { %v83_v34 = vsel %vm52_vm0, %v46_v31, 0.0  ;;  %v80_v35 = vsel %vm52_vm0, %v45_v32, 0.0  ;;  %v50_v42 = vmul.f32 %v208_v1, %v30_v39  ;;  %v51_v47 = vmul.f32 %v208_v1, %v31_v46 }
   0xc   :  { %v86_v37 = vsel %vm52_vm0, %v47_v33, 0.0  ;;  %v92_v43 = vsel %vm52_vm0, %v49_v40, 0.0  ;;  %v89_v44 = vsel %vm52_vm0, %v48_v41, 0.0  ;;  %v134_v1 = vstv %s295_s2 }
   0xd   :  { %v95_v45 = vsel %vm52_vm0, %v50_v42, 0.0  ;;  %v98_v48 = vsel %vm52_vm0, %v51_v47, 0.0 }
   0xe   :  { %57 = vadd.xlane.f32.xlu0 %v56_v16  ;;  %63 = vadd.xlane.f32.xlu1 %v62_v17 }
   0xf   :  { %69 = vadd.xlane.f32.xlu2 %v68_v18 }
  0x16   :  { %75 = vadd.xlane.f32.xlu1 %v74_v25  ;;  %72 = vadd.xlane.f32.xlu0 %v71_v26 }
  0x17   :  { %78 = vadd.xlane.f32.xlu2 %v77_v28 }
  0x1e   :  { %84 = vadd.xlane.f32.xlu1 %v83_v34  ;;  %81 = vadd.xlane.f32.xlu0 %v80_v35 }
  0x1f   :  { %87 = vadd.xlane.f32.xlu2 %v86_v37 }
  0x26   :  { %93 = vadd.xlane.f32.xlu1 %v92_v43  ;;  %90 = vadd.xlane.f32.xlu0 %v89_v44 }
  0x27   :  { %96 = vadd.xlane.f32.xlu2 %v95_v45 }
  0x2e   :  { %99 = vadd.xlane.f32.xlu0 %v98_v48 }
  0x79   :  { %v55_v49 = vpop.xlane.xlu0 %54  ;;  %v61_v51 = vpop.xlane.xlu1 %60 }
  0x7a   :  { %101 = vxpose.xlu1.b32.start [1/16] (narrow) %v55_v49, 8  ;;  %v67_v53 = vpop.xlane.xlu2 %66 }
  0x81   :  { %v58_v50 = vpop.xlane.xlu0 %57  ;;  %v64_v52 = vpop.xlane.xlu1 %63 }
  0x82   :  { %102 = vxpose.xlu1.b32.cont [2/16] (narrow) %v58_v50, 8  ;;  %v70_v54 = vpop.xlane.xlu2 %69 }
  0x89   :  { %v73_v55 = vpop.xlane.xlu0 %72  ;;  %v76_v56 = vpop.xlane.xlu1 %75 }
  0x8a   :  { %103 = vxpose.xlu1.b32.cont [3/16] (narrow) %v61_v51, 8  ;;  %v79_v57 = vpop.xlane.xlu2 %78 }
  0x91   :  { %v82_v58 = vpop.xlane.xlu0 %81  ;;  %v85_v59 = vpop.xlane.xlu1 %84 }
  0x92   :  { %104 = vxpose.xlu1.b32.cont [4/16] (narrow) %v64_v52, 8  ;;  %v88_v60 = vpop.xlane.xlu2 %87 }
  0x99   :  { %v91_v61 = vpop.xlane.xlu0 %90  ;;  %v94_v62 = vpop.xlane.xlu1 %93 }
  0x9a   :  { %105 = vxpose.xlu1.b32.cont [5/16] (narrow) %v67_v53, 8  ;;  %v97_v63 = vpop.xlane.xlu2 %96 }
  0xa1   :  { %v100_v0 = vpop.xlane.xlu0 %99 }
  0xa2   :  { %106 = vxpose.xlu1.b32.cont [6/16] (narrow) %v70_v54, 8 }
  0xaa   :  { %107 = vxpose.xlu1.b32.cont [7/16] (narrow) %v73_v55, 8 }
  0xb2   :  { %108 = vxpose.xlu1.b32.cont [8/16] (narrow) %v76_v56, 8 }
  0xba   :  { %109 = vxpose.xlu1.b32.cont [9/16] (narrow) %v79_v57, 8 }
  0xc2   :  { %110 = vxpose.xlu1.b32.cont [10/16] (narrow) %v82_v58, 8 }
  0xca   :  { %111 = vxpose.xlu1.b32.cont [11/16] (narrow) %v85_v59, 8 }
  0xd2   :  { %112 = vxpose.xlu1.b32.cont [12/16] (narrow) %v88_v60, 8 }
  0xda   :  { %113 = vxpose.xlu1.b32.cont [13/16] (narrow) %v91_v61, 8 }
  0xe2   :  { %114 = vxpose.xlu1.b32.cont [14/16] (narrow) %v94_v62, 8 }
  0xea   :  { %115 = vxpose.xlu1.b32.cont [15/16] (narrow) %v97_v63, 8 }
  0xf2   :  { %116 = vxpose.xlu1.b32.end [16/16] (narrow) %v100_v0, 8 }
 0x11e   :  { %v117_v2 = vpop.trf.xlu1 }
 0x11f   :  { %v135_v3 = vadd.f32 %v134_v1, %v117_v2 }
 0x121   :  { %136 = vst [vmem:[#allocation3] sm:$0x1] %v135_v3 }
 0x122   :  { %147 = dma.vmem_to_hbm [thread:$0]  %s143_s20, 16, %s145_s1, [#allocation4]  }
 0x123   :  { %179 = dma.done.wait [#allocation4], 16  }
 0x124   :  { %180 = vsyncadd [#allocation4], 4294967280 }
 0x125   :  { %152 = vsyncpa [#allocation4], 1 }

</bundles_post_ra>
